<compile_context>
chip_gen: v6e
topology: v6e:2x2x1
jax: 0.10.0
libtpu: 0.0.40
codegen_flags: <defaults>
</compile_context>

<pallas_src>
import jax
import jax.numpy as jnp
from jax.experimental import pallas as pl
from jax.experimental.pallas import tpu as pltpu

STATE_DIM = 2
ACTION_DIM = 1
DIMS = [STATE_DIM + ACTION_DIM, 32, 64, 32, 1]

_LANE = 128


def _round_up(x, m):
    return ((x + m - 1) // m) * m


def _critic_kernel(sa_ref,
                   w1_ref, b1_ref,
                   w2_ref, b2_ref,
                   w3_ref, b3_ref,
                   w4_ref, b4_ref,
                   out_ref):
    """All activations are [features, TB]; the batch tile sits on the lane axis."""
    sa = sa_ref[...]                                                   # [3,  TB]

    # Layer 1 (the torch cat([s, a]) is already fused into the sa slab).
    h = jnp.dot(w1_ref[...], sa, preferred_element_type=jnp.float32)  # [32, TB] f32
    h = jnp.maximum(h + b1_ref[...], 0.0)

    # Layer 2
    h = jnp.dot(w2_ref[...], h.astype(w2_ref.dtype),
                preferred_element_type=jnp.float32) + b2_ref[...]     # [64, TB]
    h = jnp.maximum(h, 0.0)

    # Layer 3
    h = jnp.dot(w3_ref[...], h.astype(w3_ref.dtype),
                preferred_element_type=jnp.float32) + b3_ref[...]     # [32, TB]
    h = jnp.maximum(h, 0.0)

    # Layer 4 (no activation)
    q = jnp.dot(w4_ref[...], h.astype(w4_ref.dtype),
                preferred_element_type=jnp.float32) + b4_ref[...]     # [1,  TB]
    out_ref[...] = q.astype(out_ref.dtype)                            # lane-dense store


def init_critic_params(key):
    """PyTorch nn.Linear default init (U[-1/sqrt(fan_in), +]). Weights stored [out, in]."""
    params = []
    for i in range(len(DIMS) - 1):
        fan_in, fan_out = DIMS[i], DIMS[i + 1]
        bound = 1.0 / (fan_in ** 0.5)
        key, kw, kb = jax.random.split(key, 3)
        w = jax.random.uniform(kw, (fan_out, fan_in), jnp.float32, -bound, bound)
        b = jax.random.uniform(kb, (fan_out, 1), jnp.float32, -bound, bound)
        params.append((w, b))
    return params


def critic_forward_pallas(s, a, params, *, block_b=None, compute_dtype=jnp.float32):
    """s: [B, STATE_DIM], a: [B, ACTION_DIM] -> q: [B, 1].

    Call this under jax.jit so the concat+transpose producer fuses into a single
    XLA pass in front of the kernel.

    block_b: batch tile in rows (rounded to a multiple of 128).  Default targets
      8192 but is capped so the 1-D grid keeps >= 2 steps (both v7x TensorCores
      get work); VMEM is never the constraint for this kernel (< a few MiB).
    compute_dtype: f32 (default, matches the PyTorch module) or bf16 for
      v6e/v7x.  bf16 shrinks resident weights / MXU passes; accumulation and all
      elementwise math (bias add, ReLU) stay f32 so the kernel also lowers on
      v5e, but results deviate from the f32 reference by more than 1e-4.
    """
    B = s.shape[0]
    b_ceil = _round_up(B, _LANE)

    if block_b is None:
        # Big tiles amortize the ~0.35us per-grid-step overhead; cap at half the
        # batch so the "parallel" grid axis has >= 2 steps whenever B allows it.
        block_b = min(8192, max(_LANE, b_ceil // 2))
    tb = min(_round_up(block_b, _LANE), b_ceil)
    grid = (pl.cdiv(B, tb),)

    # Single fused producer: concat + transpose (+ optional cast) in one XLA
    # fusion.  No explicit padding: Pallas clamps the ragged last input block and
    # masks the ragged output store; the garbage tail lanes never touch valid
    # columns (all contractions are over the feature axis).
    saT = jnp.concatenate([s, a], axis=1).T.astype(compute_dtype)      # [3, B]

    (w1, b1), (w2, b2), (w3, b3), (w4, b4) = params
    w1c = w1.astype(compute_dtype)
    w2c = w2.astype(compute_dtype)
    w3c = w3.astype(compute_dtype)
    w4c = w4.astype(compute_dtype)
    # Biases stay f32 so all elementwise math is f32 (no bf16 VPU on v5e).

    def act_spec(feat):
        return pl.BlockSpec((feat, tb), lambda i: (0, i))

    def resident_spec(shape):
        # Constant block index -> stays VMEM-resident, never re-DMA'd per grid step.
        return pl.BlockSpec(tuple(shape), lambda i: (0, 0))

    in_isz = jnp.dtype(compute_dtype).itemsize
    flops = 2 * B * sum(DIMS[i] * DIMS[i + 1] for i in range(len(DIMS) - 1))
    bytes_accessed = (
        B * DIMS[0] * in_isz                                  # sa slab read
        + B * DIMS[-1] * 4                                    # f32 output write
        + sum(int(w.size) * in_isz + int(b.size) * 4 for w, b in params)
    )

    out = pl.pallas_call(
        _critic_kernel,
        out_shape=jax.ShapeDtypeStruct((1, B), jnp.float32),
        grid=grid,
        in_specs=[
            act_spec(DIMS[0]),                                 # sa^T tile [3, tb]
            resident_spec(w1c.shape), resident_spec(b1.shape),
            resident_spec(w2c.shape), resident_spec(b2.shape),
            resident_spec(w3c.shape), resident_spec(b3.shape),
            resident_spec(w4c.shape), resident_spec(b4.shape),
        ],
        out_specs=pl.BlockSpec((1, tb), lambda i: (0, i)),
        compiler_params=pltpu.CompilerParams(
            dimension_semantics=("parallel",)),                # dual-TC sharding on v7x
        cost_estimate=pl.CostEstimate(
            flops=flops, transcendentals=0, bytes_accessed=bytes_accessed),
    )(saT, w1c, b1, w2c, b2, w3c, b3, w4c, b4)

    # [1, B] -> [B, 1] is layout-preserving (metadata-only reshape).
    return out.reshape(B, 1)


def critic_reference(s, a, params):
    """Plain-JAX reference (also the small-batch fast path)."""
    x = jnp.concatenate([s, a], axis=1).astype(jnp.float32)
    for i, (w, b) in enumerate(params):
        x = x @ w.T + b[:, 0]
        if i < len(params) - 1:
            x = jnp.maximum(x, 0.0)
    return x


def critic_forward(s, a, params, **kwargs):
    """Auto-dispatch: small batches are launch/producer-overhead bound -> fused XLA.

    Threshold raised per review; re-benchmark per chip generation.
    """
    if s.shape[0] < 1024:
        return critic_reference(s, a, params)
    return critic_forward_pallas(s, a, params, **kwargs)


if __name__ == "__main__":
    key = jax.random.PRNGKey(0)
    kp, ks, ka = jax.random.split(key, 3)

    params = init_critic_params(kp)

    # Small, deliberately non-multiple-of-128 batch: exercises 2 grid steps and the
    # ragged (masked) final block.  The dispatcher would route this size to XLA, so
    # call the Pallas path directly.
    B = 200
    s = jax.random.normal(ks, (B, STATE_DIM), jnp.float32)
    a = jax.random.normal(ka, (B, ACTION_DIM), jnp.float32)

    fwd = jax.jit(critic_forward_pallas)   # jit => producer fuses into one pass
    q = fwd(s, a, params)
    q = jax.block_until_ready(q)

    q_ref = critic_reference(s, a, params)
    assert q.shape == (B, 1), q.shape
    assert jnp.allclose(q, q_ref, atol=1e-4, rtol=1e-4), (q, q_ref)

    print("KERNEL_OK")
</pallas_src>

<mosaic_0001>
module attributes {stable_mosaic.version = 11 : i64} {
  func.func @_critic_kernel(%arg0: i32, %arg1: memref<3x128xf32, #tpu.memory_space<vmem>>, %arg2: memref<32x3xf32, #tpu.memory_space<vmem>>, %arg3: memref<32x1xf32, #tpu.memory_space<vmem>>, %arg4: memref<64x32xf32, #tpu.memory_space<vmem>>, %arg5: memref<64x1xf32, #tpu.memory_space<vmem>>, %arg6: memref<32x64xf32, #tpu.memory_space<vmem>>, %arg7: memref<32x1xf32, #tpu.memory_space<vmem>>, %arg8: memref<1x32xf32, #tpu.memory_space<vmem>>, %arg9: memref<1x1xf32, #tpu.memory_space<vmem>>, %arg10: memref<1x128xf32, #tpu.memory_space<vmem>>) attributes {dimension_semantics = [#tpu.dimension_semantics<parallel>], iteration_bounds = array<i64: 2>, scalar_prefetch = 0 : i64, scratch_operands = 0 : i64, tpu.core_type = #tpu.core_type<tc>, window_params = [{transform_indices = @transform_0, window_bounds = array<i64: 3, 128>}, {pipeline_mode = #tpu.pipeline_mode<synchronous>, transform_indices = @transform_1, window_bounds = array<i64: 32, 3>}, {pipeline_mode = #tpu.pipeline_mode<synchronous>, transform_indices = @transform_2, window_bounds = array<i64: 32, 1>}, {pipeline_mode = #tpu.pipeline_mode<synchronous>, transform_indices = @transform_3, window_bounds = array<i64: 64, 32>}, {pipeline_mode = #tpu.pipeline_mode<synchronous>, transform_indices = @transform_4, window_bounds = array<i64: 64, 1>}, {pipeline_mode = #tpu.pipeline_mode<synchronous>, transform_indices = @transform_5, window_bounds = array<i64: 32, 64>}, {pipeline_mode = #tpu.pipeline_mode<synchronous>, transform_indices = @transform_6, window_bounds = array<i64: 32, 1>}, {pipeline_mode = #tpu.pipeline_mode<synchronous>, transform_indices = @transform_7, window_bounds = array<i64: 1, 32>}, {pipeline_mode = #tpu.pipeline_mode<synchronous>, transform_indices = @transform_8, window_bounds = array<i64: 1, 1>}, {transform_indices = @transform_9, window_bounds = array<i64: 1, 128>}]} {
    %c0 = arith.constant 0 : index
    %c0_0 = arith.constant 0 : index
    %0 = vector.load %arg1[%c0, %c0_0] : memref<3x128xf32, #tpu.memory_space<vmem>>, vector<3x128xf32>
    %c0_1 = arith.constant 0 : index
    %c0_2 = arith.constant 0 : index
    %1 = vector.load %arg2[%c0_1, %c0_2] : memref<32x3xf32, #tpu.memory_space<vmem>>, vector<32x3xf32>
    %cst = arith.constant dense<0.000000e+00> : vector<32x128xf32>
    %2 = tpu.matmul %1, %0, %cst {dimension_numbers = #tpu.dot_dimension_numbers<[1], [0], [0], [1], [0, 0, 1, 1], [], []>} : vector<32x3xf32>, vector<3x128xf32>, vector<32x128xf32> -> vector<32x128xf32>
    %c0_3 = arith.constant 0 : index
    %c0_4 = arith.constant 0 : index
    %3 = vector.load %arg3[%c0_3, %c0_4] : memref<32x1xf32, #tpu.memory_space<vmem>>, vector<32x1xf32>
    %4 = vector.broadcast %3 : vector<32x1xf32> to vector<32x128xf32>
    %5 = arith.addf %2, %4 : vector<32x128xf32>
    %cst_5 = arith.constant 0.000000e+00 : f32
    %6 = vector.broadcast %cst_5 : f32 to vector<32x128xf32>
    %7 = arith.maximumf %5, %6 : vector<32x128xf32>
    %c0_6 = arith.constant 0 : index
    %c0_7 = arith.constant 0 : index
    %8 = vector.load %arg4[%c0_6, %c0_7] : memref<64x32xf32, #tpu.memory_space<vmem>>, vector<64x32xf32>
    %cst_8 = arith.constant dense<0.000000e+00> : vector<64x128xf32>
    %9 = tpu.matmul %8, %7, %cst_8 {dimension_numbers = #tpu.dot_dimension_numbers<[1], [0], [0], [1], [0, 0, 1, 1], [], []>} : vector<64x32xf32>, vector<32x128xf32>, vector<64x128xf32> -> vector<64x128xf32>
    %c0_9 = arith.constant 0 : index
    %c0_10 = arith.constant 0 : index
    %10 = vector.load %arg5[%c0_9, %c0_10] : memref<64x1xf32, #tpu.memory_space<vmem>>, vector<64x1xf32>
    %11 = vector.broadcast %10 : vector<64x1xf32> to vector<64x128xf32>
    %12 = arith.addf %9, %11 : vector<64x128xf32>
    %cst_11 = arith.constant 0.000000e+00 : f32
    %13 = vector.broadcast %cst_11 : f32 to vector<64x128xf32>
    %14 = arith.maximumf %12, %13 : vector<64x128xf32>
    %c0_12 = arith.constant 0 : index
    %c0_13 = arith.constant 0 : index
    %15 = vector.load %arg6[%c0_12, %c0_13] : memref<32x64xf32, #tpu.memory_space<vmem>>, vector<32x64xf32>
    %cst_14 = arith.constant dense<0.000000e+00> : vector<32x128xf32>
    %16 = tpu.matmul %15, %14, %cst_14 {dimension_numbers = #tpu.dot_dimension_numbers<[1], [0], [0], [1], [0, 0, 1, 1], [], []>} : vector<32x64xf32>, vector<64x128xf32>, vector<32x128xf32> -> vector<32x128xf32>
    %c0_15 = arith.constant 0 : index
    %c0_16 = arith.constant 0 : index
    %17 = vector.load %arg7[%c0_15, %c0_16] : memref<32x1xf32, #tpu.memory_space<vmem>>, vector<32x1xf32>
    %18 = vector.broadcast %17 : vector<32x1xf32> to vector<32x128xf32>
    %19 = arith.addf %16, %18 : vector<32x128xf32>
    %cst_17 = arith.constant 0.000000e+00 : f32
    %20 = vector.broadcast %cst_17 : f32 to vector<32x128xf32>
    %21 = arith.maximumf %19, %20 : vector<32x128xf32>
    %c0_18 = arith.constant 0 : index
    %c0_19 = arith.constant 0 : index
    %22 = vector.load %arg8[%c0_18, %c0_19] : memref<1x32xf32, #tpu.memory_space<vmem>>, vector<1x32xf32>
    %cst_20 = arith.constant dense<0.000000e+00> : vector<1x128xf32>
    %23 = tpu.matmul %22, %21, %cst_20 {dimension_numbers = #tpu.dot_dimension_numbers<[1], [0], [0], [1], [0, 0, 1, 1], [], []>} : vector<1x32xf32>, vector<32x128xf32>, vector<1x128xf32> -> vector<1x128xf32>
    %c0_21 = arith.constant 0 : index
    %c0_22 = arith.constant 0 : index
    %24 = vector.load %arg9[%c0_21, %c0_22] : memref<1x1xf32, #tpu.memory_space<vmem>>, vector<1x1xf32>
    %25 = vector.broadcast %24 : vector<1x1xf32> to vector<1x128xf32>
    %26 = arith.addf %23, %25 : vector<1x128xf32>
    %c0_23 = arith.constant 0 : index
    %c0_24 = arith.constant 0 : index
    %27 = vector.load %arg10[%c0_23, %c0_24] : memref<1x128xf32, #tpu.memory_space<vmem>>, vector<1x128xf32>
    tpu.vector_store %arg10[%c0_23, %c0_24], %26 {strides = array<i32>} : memref<1x128xf32, #tpu.memory_space<vmem>>, vector<1x128xf32>,
    return
  }
  func.func @transform_0(%arg0: i32) -> (i32, i32) {
    %c0_i32 = arith.constant 0 : i32
    %c0_i32_0 = arith.constant 0 : i32
    return %c0_i32, %arg0 : i32, i32
  }
  func.func @transform_1(%arg0: i32) -> (i32, i32) {
    %c0_i32 = arith.constant 0 : i32
    %c0_i32_0 = arith.constant 0 : i32
    %c0_i32_1 = arith.constant 0 : i32
    return %c0_i32, %c0_i32_0 : i32, i32
  }
  func.func @transform_2(%arg0: i32) -> (i32, i32) {
    %c0_i32 = arith.constant 0 : i32
    %c0_i32_0 = arith.constant 0 : i32
    %c0_i32_1 = arith.constant 0 : i32
    return %c0_i32, %c0_i32_0 : i32, i32
  }
  func.func @transform_3(%arg0: i32) -> (i32, i32) {
    %c0_i32 = arith.constant 0 : i32
    %c0_i32_0 = arith.constant 0 : i32
    %c0_i32_1 = arith.constant 0 : i32
    return %c0_i32, %c0_i32_0 : i32, i32
  }
  func.func @transform_4(%arg0: i32) -> (i32, i32) {
    %c0_i32 = arith.constant 0 : i32
    %c0_i32_0 = arith.constant 0 : i32
    %c0_i32_1 = arith.constant 0 : i32
    return %c0_i32, %c0_i32_0 : i32, i32
  }
  func.func @transform_5(%arg0: i32) -> (i32, i32) {
    %c0_i32 = arith.constant 0 : i32
    %c0_i32_0 = arith.constant 0 : i32
    %c0_i32_1 = arith.constant 0 : i32
    return %c0_i32, %c0_i32_0 : i32, i32
  }
  func.func @transform_6(%arg0: i32) -> (i32, i32) {
    %c0_i32 = arith.constant 0 : i32
    %c0_i32_0 = arith.constant 0 : i32
    %c0_i32_1 = arith.constant 0 : i32
    return %c0_i32, %c0_i32_0 : i32, i32
  }
  func.func @transform_7(%arg0: i32) -> (i32, i32) {
    %c0_i32 = arith.constant 0 : i32
    %c0_i32_0 = arith.constant 0 : i32
    %c0_i32_1 = arith.constant 0 : i32
    return %c0_i32, %c0_i32_0 : i32, i32
  }
  func.func @transform_8(%arg0: i32) -> (i32, i32) {
    %c0_i32 = arith.constant 0 : i32
    %c0_i32_0 = arith.constant 0 : i32
    %c0_i32_1 = arith.constant 0 : i32
    return %c0_i32, %c0_i32_0 : i32, i32
  }
  func.func @transform_9(%arg0: i32) -> (i32, i32) {
    %c0_i32 = arith.constant 0 : i32
    %c0_i32_0 = arith.constant 0 : i32
    return %c0_i32, %arg0 : i32, i32
  }
}

</mosaic_0001>

<bundles_post_ra>
// kernel: critic_forward_pallas.1
= control target key start
LH: loop header
LB: loop body
LE: loop exit
PB: predicated region body
PF: predicated region fallthrough
CT: control target
= control target key end

     0   :  { %s1434_s0 = inlined_call_operand.vmem [shape: f32[3,200], index: 0, kind: input, shape index: {}]   ;;  %s1435_s1 = inlined_call_operand.vmem [shape: f32[32,3], index: 1, kind: input, shape index: {}]   ;;  %s1436_s2 = inlined_call_operand.vmem [shape: f32[32,1], index: 2, kind: input, shape index: {}]   ;;  %s1437_s3 = inlined_call_operand.vmem [shape: f32[64,32], index: 3, kind: input, shape index: {}]   ;;  %s1438_s4 = inlined_call_operand.vmem [shape: f32[64,1], index: 4, kind: input, shape index: {}]   ;;  %s1439_s5 = inlined_call_operand.vmem [shape: f32[32,64], index: 5, kind: input, shape index: {}]   ;;  %s1440_s6 = inlined_call_operand.vmem [shape: f32[32,1], index: 6, kind: input, shape index: {}]   ;;  %s1441_s7 = inlined_call_operand.vmem [shape: f32[1,32], index: 7, kind: input, shape index: {}]   ;;  %s1442_s8 = inlined_call_operand.<no memory space> [shape: f32[1,1], index: 8, kind: input, shape index: {}]   ;;  %s1443_s9 = inlined_call_operand.hbm [shape: f32[1,200], index: 9, kind: output, shape index: {}]  }
   0x1   :  { %v14_v0 = vstv %s1442_s8 }
   0x2   :  { %15 = vst [vmem:[#allocation2] sm:$0x1] %v14_v0 }
   0x3   :  { %16 = vsyncpa [#allocation4], 0 }
   0x4   :  { %18 = vsyncpa [#allocation4 + $0x1], 0  ;;  %s1225_s11 = smov 0   ;;  %s1227_s12 = smov 0  }
   0x5   :  { %s1229_s13 = smov 0   ;;  %s1231_s14 = smov 0  }
   0x6 LB: > { %s1246_s8 = sadd.s32 4294967295, %s1166_s14   ;;  %s941_s15 = sadd.s32 4294967294, %s1166_s14   ;;  %s1166_s14 = sphi %s1231_s14, %s1449_s14   ;;  %s1162_s13 = sphi %s1229_s13, %s1448_s13   ;;  %s1158_s12 = sphi %s1227_s12, %s1447_s12   ;;  %s1154_s11 = sphi %s1225_s11, %s1446_s11  }
   0x7   : > { %s1250_s16 = sadd.s32 1, %s1166_s14   ;;  %s225_s17 = sadd.s32 1, %s1162_s13 }
   0x8   : > { %s222_s18 = ssub.s32 %s1166_s14, %s1250_s16  ;;  %p235_p0 = scmp.ne.s32.totalorder %s1162_s13, %s1158_s12 }
   0x9   : > { %p223_p1 = scmp.eq.s32.totalorder %s222_s18, 0  ;;  %p236_p2 = scmp.eq.s32.totalorder %s1246_s8, 1 }
   0xa   : > { %p241_p3 = scmp.ne.s32.totalorder %s1158_s12, %s1154_s11  ;;  %p242_p4 = scmp.eq.s32.totalorder %s941_s15, 1 }
   0xb   : > { %s1261_s19 = scalar_select %p223_p1, %s1162_s13, %s225_s17  }
   0xc   : > { %p1263_p5 = por %p236_p2, %p235_p0  ;;  %p1267_p6 = por %p242_p4, %p241_p3 }
   0xd   : > { %p944_p7 = scmp.ge.s32.totalorder %s1166_s14, 1  ;;  %p291_p8 = scmp.lt.s32.totalorder %s1166_s14, 3 }
   0xf   : > { %p292_p9 = pnand %p944_p7, %p291_p8 }
  0x10   : > { %p325_p10 = scmp.lt.s32.totalorder (!%p292_p9), %s1246_s8, 1  ;;  %s323_s28 = sand.u32 (!%p292_p9), 1, %s1158_s12  }
  0x11   : > { %295 = sbr.rel (%p292_p9) target bundleno = 879 (0x36f), region = 56  ;;  %s964_s30 = sshll.u32 (!%p292_p9), %s1246_s8, 4 }
  0x12   : > { %s874_s22 = scalar_lea.sflag (!%p292_p9), [#allocation4], %s323_s28 }
  0x16   : > { %v330_v1 = vld [vmem:[%s1435_s1] sm:$0xff]  ;;  %vm358_vm0 = vcmask 23552   ;;  %v337_v2 = vld [vmem:[%s1436_s2 + $0x18] sm:$0xff]  ;;  %s326_s26 = scalar_select %p325_p10, %s1246_s8, 1  ;;  %v1168_v3 = vmov 0   ;;  %v335_v4 = vld [vmem:[%s1436_s2 + $0x8] sm:$0xff] }
  0x17   : > { %1003 = vmatprep.mubr.msk.f32.mxu0 %vm358_vm0, %v330_v1  ;;  %1104 = vset.pattern.permute.xlu0 %v1168_v3  ;;  %vm371_vm1 = vcmask 1042432   ;;  %v336_v5 = vld [vmem:[%s1436_s2 + $0x10] sm:$0xff]  ;;  %v334_v6 = vld [vmem:[%s1436_s2] sm:$0xff]  ;;  %v331_v8 = vld [vmem:[%s1435_s1 + $0x8] sm:$0xff]  ;;  %vm520_vm2 = vcmask 261120   ;;  %vm686_vm3 = vcmask 523264  }
  0x18   : > { %1105 = vset.pattern.permute.xlu1 %v1168_v3  ;;  %355 = vperm.xlu0 %1104, %v337_v2   ;;  %s945_s29 = sshll.u32 %s326_s26, 2  ;;  %v332_v9 = vld [vmem:[%s1435_s1 + $0x10] sm:$0xff]  ;;  %v479_v10 = vld [vmem:[%s1438_s4 + $0x38] sm:$0xff]  ;;  %v477_v13 = vld [vmem:[%s1438_s4 + $0x28] sm:$0xff]  ;;  %vm1170_vm4 = vmmov 0   ;;  %s1171_s8 = smov [#allocation3]  }
  0x19   : > { %345 = vperm.xlu1 %1105, %v335_v4   ;;  %s328_s18 = scalar_lea.vmem %s1434_s0, %s945_s29  ;;  %v478_v11 = vld [vmem:[%s1438_s4 + $0x30] sm:$0xff]  ;;  %v333_v12 = vld [vmem:[%s1435_s1 + $0x18] sm:$0xff]  ;;  %v476_v14 = vld [vmem:[%s1438_s4 + $0x20] sm:$0xff]  ;;  %s324_s29 = scalar_lea.vmem [#allocation3], %s323_s28 }
  0x1a   : > { %v329_v7 = vld [vmem:[%s328_s18] sm:$0x7]  ;;  %v475_v15 = vld [vmem:[%s1438_s4 + $0x18] sm:$0xff]  ;;  %v474_v16 = vld [vmem:[%s1438_s4 + $0x10] sm:$0xff]  ;;  %s886_s10 = sshll.u32 %s324_s29, 4  ;;  %s1399_s18 = scalar_lea.hbm %s1443_s9, %s964_s30  ;;  %s887_s10 = int_to_ptr.vmem [resolvable:$true] %s886_s10 }
  0x1b   : > { %1001 = vmatprep.subr.msk.mxu0 %vm371_vm1, %v329_v7  ;;  %v473_v17 = vld [vmem:[%s1438_s4 + $0x8] sm:$0xff]  ;;  %v472_v18 = vld [vmem:[%s1438_s4] sm:$0xff]  ;;  %v665_v19 = vld [vmem:[%s1440_s6 + $0x18] sm:$0xff]  ;;  %s1106_s23 = scalar_lea.vmem %s887_s10, 16  ;;  %s1110_s24 = sshll.u32 %s1171_s8, 4  ;;  %s1111_s24 = int_to_ptr.vmem [resolvable:$false] %s1110_s24 }
  0x1c   : > { %350 = vperm.xlu0 %1104, %v336_v5   ;;  %1002 = vmatpush3.msk.msra.mxu0 %vm371_vm1, %v329_v7  ;;  %v664_v20 = vld [vmem:[%s1440_s6 + $0x10] sm:$0xff]  ;;  %v663_v21 = vld [vmem:[%s1440_s6 + $0x8] sm:$0xff]  ;;  %v662_v22 = vld [vmem:[%s1440_s6] sm:$0xff]  ;;  %p1107_p11 = scmp.ne.s32.totalorder %s887_s10, %s1106_s23  ;;  %s1112_s25 = scalar_lea.vmem %s1111_s24, 32 }
  0x1d   : > { %340 = vperm.xlu1 %1105, %v334_v6   ;;  %1004 = vmatmul.mubr.msk.f32.vlgmr.msra.gmra.mxu0 %vm358_vm0, %v331_v8  ;;  %v789_v23 = vld [vmem:[#allocation2] sm:$0x1]  ;;  %v465_v41 = vld [vmem:[%s1437_s3 + $0x8] sm:$0xff]  ;;  %v466_v42 = vld [vmem:[%s1437_s3 + $0x10] sm:$0xff]  ;;  %p1113_p0 = scmp.lt.s32.totalorder %s887_s10, %s1111_s24  ;;  %p1114_p1 = scmp.lt.s32.totalorder %s1112_s25, %s1106_s23 }
  0x1e   : > { %1006 = vmatprep.mubr.msk.f32.mxu0 %vm358_vm0, %v332_v9  ;;  %v464_v24 = vld [vmem:[%s1437_s3] sm:$0xff]  ;;  %v467_v43 = vld [vmem:[%s1437_s3 + $0x18] sm:$0xff]  ;;  %v469_v45 = vld [vmem:[%s1437_s3 + $0x28] sm:$0xff]  ;;  %p1108_p12 = pnand %p1107_p11, %p1263_p5 }
  0x1f   : > { %1017 = vmatprep.mubr.msk.f32.mxu1 %vm520_vm2, %v464_v24  ;;  %v468_v44 = vld [vmem:[%s1437_s3 + $0x20] sm:$0xff]  ;;  %v470_v46 = vld [vmem:[%s1437_s3 + $0x30] sm:$0xff]  ;;  %v471_v47 = vld [vmem:[%s1437_s3 + $0x38] sm:$0xff]  ;;  %p1115_p2 = por %p1114_p1, %p1113_p0 }
  0x20   : > { %517 = vperm.xlu0 %1104, %v479_v10   ;;  %v658_v48 = vld [vmem:[%s1439_s5] sm:$0xff]  ;;  %p1109_p13 = pneg %p1108_p12 }
  0x21   : > { %512 = vperm.xlu1 %1105, %v478_v11   ;;  %1007 = vmatmul.mubr.msk.f32.gmra.mxu0 %vm358_vm0, %v333_v12 }
  0x22   : > { %1045 = vmatprep.mubr.msk.f32.mxu0 %vm686_vm3, %v658_v48  ;;  %p1116_p3 = pnand %p1115_p2, %p1109_p13 }
  0x24   : > { %507 = vperm.xlu0 %1104, %v477_v13  }
  0x25   : > { %502 = vperm.xlu1 %1105, %v476_v14  }
  0x28   : > { %497 = vperm.xlu0 %1104, %v475_v15  }
  0x29   : > { %492 = vperm.xlu1 %1105, %v474_v16  }
  0x2c   : > { %487 = vperm.xlu0 %1104, %v473_v17   ;;  %v659_v17 = vld [vmem:[%s1439_s5 + $0x8] sm:$0xff] }
  0x2d   : > { %482 = vperm.xlu1 %1105, %v472_v18   ;;  %v660_v18 = vld [vmem:[%s1439_s5 + $0x10] sm:$0xff] }
  0x30   : > { %683 = vperm.xlu0 %1104, %v665_v19   ;;  %v661_v19 = vld [vmem:[%s1439_s5 + $0x18] sm:$0xff] }
  0x31   : > { %678 = vperm.xlu1 %1105, %v664_v20   ;;  %v1169_v20 = vmov 0.0  }
  0x34   : > { %673 = vperm.xlu0 %1104, %v663_v21  }
  0x35   : > { %668 = vperm.xlu1 %1105, %v662_v22  }
  0x38   : > { %792 = vperm.xlu0 %1104, %v789_v23  }
  0x93   : > { %v356_v25 = vpop.permute.xlu0 %355 }
  0x94   : > { %v346_v27 = vpop.permute.xlu1 %345 }
  0x97   : > { %v351_v31 = vpop.permute.xlu0 %350 }
  0x98   : > { %v341_v36 = vpop.permute.xlu1 %340 }
  0x9b   : > { %v518_v51 = vpop.permute.xlu0 %517 }
  0x9c   : > { %v513_v53 = vpop.permute.xlu1 %512 }
  0x9f   : > { %v508_v56 = vpop.permute.xlu0 %507 }
  0xa0   : > { %v503_v58 = vpop.permute.xlu1 %502 }
  0xa3   : > { %v498_v1 = vpop.permute.xlu0 %497 }
  0xa4   : > { %v493_v4 = vpop.permute.xlu1 %492 }
  0xa7   : > { %v488_v9 = vpop.permute.xlu0 %487 }
  0xa8   : > { %v483_v12 = vpop.permute.xlu1 %482 }
  0xab   : > { %v684_v21 = vpop.permute.xlu0 %683 }
  0xac   : > { %v679_v23 = vpop.permute.xlu1 %678 }
  0xdd   : > { %v1005_v26 = vpop.f32.mrf.mxu0 }
  0xde   : > { %v447_v33 = vadd.f32 %v1005_v26, %v346_v27  ;;  %v674_v27 = vpop.permute.xlu0 %673 }
  0xdf   : > { %v441_v28 = vpop.f32.mrf.mxu0 }
  0xe0   : > { %v442_v37 = vadd.f32 %v441_v28, %v341_v36  ;;  %v461_v39 = vmax.f32 %v447_v33, 0.0 }
  0xe1   : > { %v1008_v29 = vpop.f32.mrf.mxu0 }
  0xe2   : > { %v457_v30 = vadd.f32 %v1008_v29, %v356_v25  ;;  %v460_v40 = vmax.f32 %v442_v37, 0.0  ;;  %v788_v37 = vld [vmem:[%s1441_s7] sm:$0x1] }
  0xe3   : > { %v451_v32 = vpop.f32.mrf.mxu0 }
  0xe4   : > { %v463_v34 = vmax.f32 %v457_v30, 0.0  ;;  %v452_v35 = vadd.f32 %v451_v32, %v351_v31  ;;  %v669_v32 = vpop.permute.xlu1 %668 }
  0xe6   : > { %v462_v38 = vmax.f32 %v452_v35, 0.0  ;;  %1009 = vmatprep.subr.mxu1 %v463_v34 }
  0xe7   : > { %1010 = vmatpush3.msra.mxu1 %v463_v34 }
  0xe8   : > { %1011 = vmatprep.subr.mxu1 %v462_v38 }
  0xe9   : > { %1012 = vmatpush3.msra.mxu1 %v462_v38  ;;  %v795_v38 = vlaneseq }
  0xea   : > { %1013 = vmatprep.subr.mxu1 %v461_v39 }
  0xeb   : > { %1014 = vmatpush3.msra.mxu1 %v461_v39  ;;  %v796_v39 = vshrl.u32 %v795_v38, 7 }
  0xec   : > { %1015 = vmatprep.subr.mxu1 %v460_v40 }
  0xed   : > { %1016 = vmatpush3.msra.mxu1 %v460_v40  ;;  %v797_v40 = vsub.s32 0, %v796_v39 }
  0xee   : > { %1018 = vmatmul.mubr.msk.f32.vlgmr.msra.gmra.mxu1 %vm520_vm2, %v465_v41  ;;  %1051 = vmatprep.subr.mxu1 %v1169_v20  ;;  %v793_v41 = vpop.permute.xlu0 %792 }
  0xef   : > { %1020 = vmatprep.mubr.msk.f32.mxu1 %vm520_vm2, %v466_v42  ;;  %v798_v42 = vrot.slane %v793_v41, %v797_v40 }
  0xf2   : > { %1021 = vmatmul.mubr.msk.f32.gmra.mxu1 %vm520_vm2, %v467_v43 }
  0xf3   : > { %1023 = vmatprep.mubr.msk.f32.mxu1 %vm520_vm2, %v468_v44 }
  0xf6   : > { %1024 = vmatmul.mubr.msk.f32.gmra.mxu1 %vm520_vm2, %v469_v45 }
  0xf7   : > { %1026 = vmatprep.mubr.msk.f32.mxu1 %vm520_vm2, %v470_v46 }
  0xfa   : > { %1027 = vmatmul.mubr.msk.f32.gmra.mxu1 %vm520_vm2, %v471_v47 }
  0xfb   : > { %1059 = vmatprep.mubr.msk.f32.mxu1 %vm1170_vm4, %v1169_v20 }
 0x1ae   : > { %v1019_v49 = vpop.f32.mrf.mxu1 }
 0x1af   : > { %v617_v10 = vadd.f32 %v1019_v49, %v488_v9 }
 0x1b0   : > { %v611_v50 = vpop.f32.mrf.mxu1 }
 0x1b1   : > { %v612_v13 = vadd.f32 %v611_v50, %v483_v12  ;;  %v651_v15 = vmax.f32 %v617_v10, 0.0 }
 0x1b2   : > { %v1022_v52 = vpop.f32.mrf.mxu1 }
 0x1b3   : > { %v627_v5 = vadd.f32 %v1022_v52, %v498_v1  ;;  %v650_v16 = vmax.f32 %v612_v13, 0.0 }
 0x1b4   : > { %v621_v54 = vpop.f32.mrf.mxu1 }
 0x1b5   : > { %v622_v7 = vadd.f32 %v621_v54, %v493_v4  ;;  %v653_v11 = vmax.f32 %v627_v5, 0.0 }
 0x1b6   : > { %v1025_v55 = vpop.f32.mrf.mxu1 }
 0x1b7   : > { %v637_v62 = vadd.f32 %v1025_v55, %v508_v56  ;;  %v652_v14 = vmax.f32 %v622_v7, 0.0 }
 0x1b8   : > { %v631_v57 = vpop.f32.mrf.mxu1 }
 0x1b9   : > { %v632_v2 = vadd.f32 %v631_v57, %v503_v58  ;;  %v655_v6 = vmax.f32 %v637_v62, 0.0 }
 0x1ba   : > { %v1028_v59 = vpop.f32.mrf.mxu1 }
 0x1bb   : > { %v647_v60 = vadd.f32 %v1028_v59, %v518_v51  ;;  %v654_v8 = vmax.f32 %v632_v2, 0.0 }
 0x1bc   : > { %v641_v61 = vpop.f32.mrf.mxu1 }
 0x1bd   : > { %v657_v63 = vmax.f32 %v647_v60, 0.0  ;;  %v642_v0 = vadd.f32 %v641_v61, %v513_v53 }
 0x1bf   : > { %v656_v3 = vmax.f32 %v642_v0, 0.0  ;;  %1029 = vmatprep.subr.mxu0 %v657_v63 }
 0x1c0   : > { %1030 = vmatpush3.msra.mxu0 %v657_v63 }
 0x1c1   : > { %1031 = vmatprep.subr.mxu0 %v656_v3 }
 0x1c2   : > { %1032 = vmatpush3.msra.mxu0 %v656_v3 }
 0x1c3   : > { %1033 = vmatprep.subr.mxu0 %v655_v6 }
 0x1c4   : > { %1034 = vmatpush3.msra.mxu0 %v655_v6 }
 0x1c5   : > { %1035 = vmatprep.subr.mxu0 %v654_v8 }
 0x1c6   : > { %1036 = vmatpush3.msra.mxu0 %v654_v8 }
 0x1c7   : > { %1037 = vmatprep.subr.mxu0 %v653_v11 }
 0x1c8   : > { %1038 = vmatpush3.msra.mxu0 %v653_v11 }
 0x1c9   : > { %1039 = vmatprep.subr.mxu0 %v652_v14 }
 0x1ca   : > { %1040 = vmatpush3.msra.mxu0 %v652_v14 }
 0x1cb   : > { %1041 = vmatprep.subr.mxu0 %v651_v15 }
 0x1cc   : > { %1042 = vmatpush3.msra.mxu0 %v651_v15 }
 0x1cd   : > { %1043 = vmatprep.subr.mxu0 %v650_v16 }
 0x1ce   : > { %1044 = vmatpush3.msra.mxu0 %v650_v16 }
 0x1cf   : > { %1046 = vmatmul.mubr.msk.f32.vlgmr.msra.gmra.mxu0 %vm686_vm3, %v659_v17 }
 0x1d0   : > { %1048 = vmatprep.mubr.msk.f32.mxu0 %vm686_vm3, %v660_v18 }
 0x1d3   : > { %1049 = vmatmul.mubr.msk.f32.gmra.mxu0 %vm686_vm3, %v661_v19 }
 0x28f   : > { %v1047_v22 = vpop.f32.mrf.mxu0 }
 0x290   : > { %v771_v29 = vadd.f32 %v1047_v22, %v674_v27 }
 0x291   : > { %v765_v24 = vpop.f32.mrf.mxu0 }
 0x292   : > { %v766_v33 = vadd.f32 %v765_v24, %v669_v32  ;;  %v785_v35 = vmax.f32 %v771_v29, 0.0 }
 0x293   : > { %v1050_v25 = vpop.f32.mrf.mxu0 }
 0x294   : > { %v781_v26 = vadd.f32 %v1050_v25, %v684_v21  ;;  %v784_v36 = vmax.f32 %v766_v33, 0.0 }
 0x295   : > { %v775_v28 = vpop.f32.mrf.mxu0 }
 0x296   : > { %v787_v30 = vmax.f32 %v781_v26, 0.0  ;;  %v776_v31 = vadd.f32 %v775_v28, %v679_v23 }
 0x298   : > { %v786_v34 = vmax.f32 %v776_v31, 0.0  ;;  %1052 = vmatpush3.msra.mxu1 %v787_v30 }
 0x299   : > { %1053 = vmatprep.subr.mxu1 %v1169_v20 }
 0x29a   : > { %1054 = vmatpush3.msra.mxu1 %v786_v34 }
 0x29b   : > { %1055 = vmatprep.subr.mxu1 %v1169_v20 }
 0x29c   : > { %1056 = vmatpush3.msra.mxu1 %v785_v35 }
 0x29d   : > { %1057 = vmatprep.subr.mxu1 %v1169_v20 }
 0x29e   : > { %1058 = vmatpush3.msra.mxu1 %v784_v36 }
 0x29f   : > { %1060 = vmatmul.mubr.msk.f32.vlgmr.msra.gmra.mxu1 %vm520_vm2, %v788_v37 }
 0x35f   : > { %v868_v43 = vpop.f32.mrf.mxu1 }
 0x360   : > { %v869_v44 = vadd.f32 %v868_v43, %v798_v42 }
 0x361   : > { %v1061_v45 = vpop.f32.mrf.mxu1 }
 0x362   : > { %872 = vst [vmem:[%s324_s29] sm:$0x1] %v869_v44 }
 0x363   : > { %1119 = shalt.err (!%p1116_p3)
}
 0x364   : > { %s1120_s26 = scalar_lea.hbm %s1399_s18, 16  ;;  %s1124_s30 = scalar_lea.hbm %s1443_s9, 32 }
 0x365   : > { %p1121_p4 = scmp.ne.s32.totalorder %s1399_s18, %s1120_s26  ;;  %p1125_p9 = scmp.lt.s32.totalorder %s1399_s18, %s1443_s9 }
 0x366   : > { %p1126_p10 = scmp.lt.s32.totalorder %s1124_s30, %s1120_s26 }
 0x367   : > { %p1122_p7 = pnand %p1121_p4, %p1263_p5 }
 0x368   : > { %p1127_p11 = por %p1126_p10, %p1125_p9 }
 0x369   : > { %p1123_p8 = pneg %p1122_p7 }
 0x36b   : > { %p1128_p12 = pnand %p1127_p11, %p1123_p8 }
 0x36d   : > { %1131 = shalt.err (!%p1128_p12)
}
 0x36e   : > { %1062 = dma.vmem_to_hbm [thread:$0]  (%p1263_p5), %s887_s10, 16, %s1399_s18, %s874_s22  }
 0x36f PF: > { %p1068_p13 = scmp.ge.s32.totalorder %s1166_s14, 2  ;;  %s898_s17 = sand.u32 1, %s1154_s11  }
 0x370   : > { %s899_s23 = scalar_lea.sflag [#allocation4], %s898_s17 }
 0x371   : > { %p1065_p0 = pnand %p1068_p13, %p1267_p6 }
 0x373   : > { %p1066_p1 = pneg %p1065_p0 }
 0x375   : > { %1149 = dma.done.wait (%p1066_p1), %s899_s23, 16  }
 0x376   : > { %1151 = vsyncadd (%p1066_p1), %s899_s23, 4294967280  ;;  %p21_p2 = scmp.ge.s32.totalorder %s1250_s16, 4   ;;  %s1446_s11 = smov %s1158_s12 }
 0x377   : > { %s1447_s12 = smov %s1162_s13  ;;  %s1448_s13 = smov %s1261_s19 }
 0x378   : > { %s1449_s14 = smov %s1250_s16  ;;  %23 = sbr.rel (!%p21_p2) target bundleno = 6 (0x6), region = 91 }
 0x37d   :  { %903 = vsyncpa [#allocation4], 1 }
 0x37e   :  { %905 = vsyncpa [#allocation4 + $0x1], 1 }

</bundles_post_ra>
